<compile_context>
chip_gen: v7x
topology: tpu7x:2x2x1
jax: 0.10.0
libtpu: 0.0.40
codegen_flags: <defaults>
</compile_context>

<pallas_src>
import functools

import jax
import jax.numpy as jnp
from jax.experimental import pallas as pl
from jax.experimental.pallas import tpu as pltpu


def causal_bow_kernel(w_ref, x_ref, o_ref):
    # w_ref: (tq, T) causal uniform weights, x_ref: (T, tn), o_ref: (tq, tn).
    o_ref[...] = jnp.dot(
        w_ref[...], x_ref[...], preferred_element_type=jnp.float32
    ).astype(o_ref.dtype)


def _pick_tile(dim, target, align):
    """Largest aligned tile <= target, or the full dim if it is small."""
    if dim <= target:
        return dim
    return max(align, (target // align) * align)


@functools.partial(jax.jit, static_argnames=("tq", "tn"))
def causal_bow(x, *, tq=None, tn=None):
    """x: (B, T, C) -> (B, T, C) causal running mean over the T axis."""
    B, T, C = x.shape
    N = B * C

    # Uniform causal weights, built once in the wrapper (hoisted out of the
    # sequential grid loop): W[t, s] = 1/(t+1) if s <= t else 0.  This is
    # bit-for-bit the softmax of the 0/-inf masked zeros in the PyTorch module.
    row = jnp.arange(T, dtype=jnp.int32)[:, None]
    col = jnp.arange(T, dtype=jnp.int32)[None, :]
    w = jnp.where(col <= row, 1.0 / (row + 1).astype(jnp.float32), 0.0)
    w = w.astype(x.dtype)  # bf16 inputs feed the MXU at full rate

    # Lane-dense layout: (B, T, C) -> (T, B*C) so the matmul output's last dim
    # is B*C (unmasked vst when >= 128) and all batches share one matmul.
    x2d = jnp.swapaxes(x, 0, 1).reshape(T, N)

    if tq is None:
        tq = _pick_tile(T, 256, 8)      # query-tile (sublane aligned)
    if tn is None:
        tn = _pick_tile(N, 512, 128)    # lane-tile (lane aligned)

    grid = (pl.cdiv(T, tq), pl.cdiv(N, tn))

    y2d = pl.pallas_call(
        causal_bow_kernel,
        out_shape=jax.ShapeDtypeStruct((T, N), x.dtype),
        grid=grid,
        in_specs=[
            # Same block index across the lane axis -> weight tile stays
            # resident; the full weight matrix is only ever built once.
            pl.BlockSpec((tq, T), lambda qi, ni: (qi, 0)),
            pl.BlockSpec((T, tn), lambda qi, ni: (0, ni)),
        ],
        out_specs=pl.BlockSpec((tq, tn), lambda qi, ni: (qi, ni)),
        compiler_params=pltpu.CompilerParams(
            # Both axes independent -> v7x can shard them across its 2 TCs.
            dimension_semantics=("parallel", "parallel"),
            # Explicit scoped-VMEM limit with headroom; fits v7x's 64 MiB
            # physical VMEM and raises the 16/32 MiB defaults on v5e/v6e.
            vmem_limit_bytes=48 * 1024 * 1024,
        ),
    )(w, x2d)

    return jnp.swapaxes(y2d.reshape(T, B, C), 0, 1)


if __name__ == "__main__":
    # block_size = T = 8; B*C = 128 gives a lane-dense output slab.
    B, T, C = 2, 8, 64
    key = jax.random.PRNGKey(0)
    x = jax.random.normal(key, (B, T, C), dtype=jnp.float32)

    y = jax.block_until_ready(causal_bow(x))

    # Reference: causal running mean y[b, t] = mean(x[b, :t+1]).
    y_ref = jnp.cumsum(x, axis=1) / jnp.arange(1, T + 1, dtype=jnp.float32)[None, :, None]
    assert y.shape == (B, T, C)
    assert jnp.allclose(y, y_ref, atol=1e-5, rtol=1e-5), "mismatch vs reference"

    print("KERNEL_OK")
</pallas_src>

<mosaic_0001>
module attributes {stable_mosaic.version = 11 : i64} {
  func.func @causal_bow_kernel(%arg0: i32, %arg1: i32, %arg2: memref<8x8xf32, #tpu.memory_space<vmem>>, %arg3: memref<8x128xf32, #tpu.memory_space<vmem>>, %arg4: memref<8x128xf32, #tpu.memory_space<vmem>>) attributes {dimension_semantics = [#tpu.dimension_semantics<parallel>, #tpu.dimension_semantics<parallel>], iteration_bounds = array<i64: 1, 1>, scalar_prefetch = 0 : i64, scratch_operands = 0 : i64, tpu.core_type = #tpu.core_type<tc>, window_params = [{transform_indices = @transform_0, window_bounds = array<i64: 8, 8>}, {transform_indices = @transform_1, window_bounds = array<i64: 8, 128>}, {transform_indices = @transform_2, window_bounds = array<i64: 8, 128>}]} {
    %c0 = arith.constant 0 : index
    %c0_0 = arith.constant 0 : index
    %0 = vector.load %arg2[%c0, %c0_0] : memref<8x8xf32, #tpu.memory_space<vmem>>, vector<8x8xf32>
    %c0_1 = arith.constant 0 : index
    %c0_2 = arith.constant 0 : index
    %1 = vector.load %arg3[%c0_1, %c0_2] : memref<8x128xf32, #tpu.memory_space<vmem>>, vector<8x128xf32>
    %cst = arith.constant dense<0.000000e+00> : vector<8x128xf32>
    %2 = tpu.matmul %0, %1, %cst {dimension_numbers = #tpu.dot_dimension_numbers<[1], [0], [0], [1], [0, 0, 1, 1], [], []>} : vector<8x8xf32>, vector<8x128xf32>, vector<8x128xf32> -> vector<8x128xf32>
    %c0_3 = arith.constant 0 : index
    %c0_4 = arith.constant 0 : index
    %3 = vector.load %arg4[%c0_3, %c0_4] : memref<8x128xf32, #tpu.memory_space<vmem>>, vector<8x128xf32>
    tpu.vector_store %arg4[%c0_3, %c0_4], %2 {strides = array<i32>} : memref<8x128xf32, #tpu.memory_space<vmem>>, vector<8x128xf32>,
    return
  }
  func.func @transform_0(%arg0: i32, %arg1: i32) -> (i32, i32) {
    %c0_i32 = arith.constant 0 : i32
    %c0_i32_0 = arith.constant 0 : i32
    return %arg0, %c0_i32 : i32, i32
  }
  func.func @transform_1(%arg0: i32, %arg1: i32) -> (i32, i32) {
    %c0_i32 = arith.constant 0 : i32
    %c0_i32_0 = arith.constant 0 : i32
    return %c0_i32, %arg1 : i32, i32
  }
  func.func @transform_2(%arg0: i32, %arg1: i32) -> (i32, i32) {
    %c0_i32 = arith.constant 0 : i32
    return %arg0, %arg1 : i32, i32
  }
}

</mosaic_0001>

<bundles_post_ra>
// kernel: causal_bow.1
= control target key start
LH: loop header
LB: loop body
LE: loop exit
PB: predicated region body
PF: predicated region fallthrough
CT: control target
= control target key end

     0   :  { %vm13_vm0 = vcmask 64512   ;;  %v102_v0 = vmov 0.0   ;;  %vm103_vm1 = vmmov 0   ;;  %s128_s1 = inlined_call_operand.vmem [shape: f32[8,128], index: 1, kind: input, shape index: {}]   ;;  %s129_s0 = inlined_call_operand.vmem [shape: f32[8,8], index: 0, kind: input, shape index: {}]   ;;  %s130_s2 = inlined_call_operand.vmem [shape: f32[8,128], index: 2, kind: output, shape index: {}]  }
   0x1   :  { %95 = vmatprep.subr.mxu0 %v102_v0  ;;  %v12_v1 = vld [vmem:[%s128_s1] sm:$0xff]  ;;  %97 = vmatprep.mubr.msk.f32.mxu0 %vm103_vm1, %v102_v0 }
   0x2   :  { %v11_v2 = vld [vmem:[%s129_s0] sm:$0xff]  ;;  %96 = vmatpush3.msra.mxu0 %v12_v1 }
   0x3   :  { %98 = vmatmul.mubr.msk.f32.vlgmr.msra.gmra.mrb[0].mxu0 %vm13_vm0, %v11_v2 }
  0xd6   :  { %v83_v3 = vpop.f32.mrb[0].mxu0 }
  0xd7   :  { %87 = vst [vmem:[%s130_s2] sm:$0xff] %v83_v3  ;;  %v99_v4 = vpop.f32.mrb[1].mxu0 }

</bundles_post_ra>
